<compile_context>
chip_gen: v7x
topology: tpu7x:2x2x1
jax: 0.10.0
libtpu: 0.0.40
codegen_flags: <defaults>
</compile_context>

<pallas_src>
import jax
import jax.numpy as jnp
from jax import lax
from jax.experimental import pallas as pl
from jax.experimental.pallas import tpu as pltpu


# ----------------------------------------------------------------------------
# Kernel 1: max_unpool2d(kernel_size=2, stride=2), NHWC.
# Output element [n, h, dy, w, dx*C + c] = unpooled value at (2h+dy, 2w+dx, c),
# so reshaping to (N, 2H, 2W, C) on the host is a pure row-major reshape
# (no transpose of the 4x tensor).
# ----------------------------------------------------------------------------
def _unpool_kernel(x_ref, idx_ref, o_ref):
    x = x_ref[0]          # (H, W, C) f32
    idx = idx_ref[0]      # (H, W, C) int32, flat index into the (2H)*(2W) plane
    H, W, C = x.shape
    ih = lax.broadcasted_iota(jnp.int32, (H, W, C), 0)
    iw = lax.broadcasted_iota(jnp.int32, (H, W, C), 1)
    base = (2 * ih) * (2 * W) + 2 * iw          # hoisted out of the dy/dx loop
    zero = jnp.zeros_like(x)
    for dy in range(2):
        halves = []
        for dx in range(2):
            tgt = base + (dy * 2 * W + dx)
            halves.append(jnp.where(idx == tgt, x, zero))
        # (H, W, 2*C): lane-concatenate the two dx phases of this dy row.
        o_ref[0, :, dy, :, :] = jnp.concatenate(halves, axis=-1)


def max_unpool2d_2x2(x_nhwc, idx_nhwc):
    N, H, W, C = x_nhwc.shape
    out = pl.pallas_call(
        _unpool_kernel,
        out_shape=jax.ShapeDtypeStruct((N, H, 2, W, 2 * C), jnp.float32),
        grid=(N,),
        in_specs=[
            pl.BlockSpec((1, H, W, C), lambda n: (n, 0, 0, 0)),
            pl.BlockSpec((1, H, W, C), lambda n: (n, 0, 0, 0)),
        ],
        out_specs=pl.BlockSpec((1, H, 2, W, 2 * C), lambda n: (n, 0, 0, 0, 0)),
        compiler_params=pltpu.CompilerParams(dimension_semantics=("parallel",)),
    )(x_nhwc, idx_nhwc)
    # Pure reshape: row-major order of (N,H,2,W,2,C) == row-major (N,2H,2W,C).
    return out.reshape(N, 2 * H, 2 * W, C)


# ----------------------------------------------------------------------------
# Kernel 2: fused chain of [3x3 conv (SAME) + folded-BN affine + ReLU] layers.
# Activations are kept as (H*W, C) (spatial on sublanes, channels on lanes),
# entirely in VMEM between layers.  Each layer:
#   * zero-row halo via in-VMEM concatenation (no jnp.pad HBM passes),
#   * im2col: 9 shifted views, left/right edge-masked, lane-concatenated into
#     (H*W, 9*Cin),
#   * one MXU GEMM against (9*Cin, Cout), then scale/bias + ReLU.
# ----------------------------------------------------------------------------
def _make_fused_convs_kernel(num_layers, Hout, Wout):
    P = Hout * Wout

    def kernel(u_ref, *refs):
        o_ref = refs[-1]
        # Horizontal-tap edge masks (hoisted; shared by every layer).
        col_id = lax.broadcasted_iota(jnp.int32, (P, 1), 0) % Wout
        not_left = col_id != 0              # tap ox = -1 invalid at j == 0
        not_right = col_id != (Wout - 1)    # tap ox = +1 invalid at j == Wout-1

        def conv3x3_bn_relu(a, wmat, scale, bias):
            # a: (P, Cin)   wmat: (9*Cin, Cout)   scale/bias: (1, Cout)
            cin = a.shape[1]
            zpad = jnp.zeros((Wout + 1, cin), jnp.float32)
            ap = jnp.concatenate([zpad, a, zpad], axis=0)   # (P + 2*Wout + 2, Cin)
            taps = []
            for oy in (-1, 0, 1):
                for ox in (-1, 0, 1):
                    s = (oy + 1) * Wout + (ox + 1)          # static slice start
                    t = ap[s:s + P, :]                      # (P, Cin)
                    if ox == -1:
                        t = jnp.where(not_left, t, 0.0)
                    elif ox == 1:
                        t = jnp.where(not_right, t, 0.0)
                    taps.append(t)
            col = jnp.concatenate(taps, axis=1)             # (P, 9*Cin) im2col
            h = jnp.dot(col, wmat, preferred_element_type=jnp.float32)
            return jnp.maximum(h * scale + bias, 0.0)

        a = u_ref[0]                                        # (P, Cin)
        for l in range(num_layers):
            w_ref = refs[3 * l]
            s_ref = refs[3 * l + 1]
            b_ref = refs[3 * l + 2]
            a = conv3x3_bn_relu(a, w_ref[...], s_ref[...], b_ref[...])
        o_ref[0] = a                                        # (P, Cout)

    return kernel


def fused_convs(u_flat, layer_params, Hout, Wout):
    # u_flat: (N, P, Cin); layer_params: list of (wmat (9*Cin_l, Cout_l),
    # scale (1, Cout_l), bias (1, Cout_l)).
    N, P, Cin = u_flat.shape
    Cout = layer_params[-1][0].shape[-1]
    num_layers = len(layer_params)

    in_specs = [pl.BlockSpec((1, P, Cin), lambda n: (n, 0, 0))]
    args = [u_flat]
    for (w, s, b) in layer_params:
        in_specs.append(pl.BlockSpec(w.shape, lambda n: (0, 0)))
        in_specs.append(pl.BlockSpec(s.shape, lambda n: (0, 0)))
        in_specs.append(pl.BlockSpec(b.shape, lambda n: (0, 0)))
        args += [w, s, b]

    kernel = _make_fused_convs_kernel(num_layers, Hout, Wout)
    return pl.pallas_call(
        kernel,
        out_shape=jax.ShapeDtypeStruct((N, P, Cout), jnp.float32),
        grid=(N,),
        in_specs=in_specs,
        out_specs=pl.BlockSpec((1, P, Cout), lambda n: (n, 0, 0)),
        compiler_params=pltpu.CompilerParams(dimension_semantics=("parallel",)),
    )(*args)


# ----------------------------------------------------------------------------
# Parameter setup + Decoder forward
# ----------------------------------------------------------------------------
def init_decoder_params(key, in_ch, out_ch, block_num=2):
    params = []
    chans = [in_ch] + [out_ch] * block_num
    eps = 1e-5
    for i in range(block_num):
        key, k1, k2 = jax.random.split(key, 3)
        cin, cout = chans[i], chans[i + 1]
        w = jax.random.normal(k1, (3, 3, cin, cout), jnp.float32) / jnp.sqrt(9.0 * cin)
        b = 0.1 * jax.random.normal(k2, (cout,), jnp.float32)      # conv bias
        gamma = jnp.ones((cout,), jnp.float32)
        beta = jnp.zeros((cout,), jnp.float32)
        running_mean = jnp.zeros((cout,), jnp.float32)
        running_var = jnp.ones((cout,), jnp.float32)
        scale = gamma / jnp.sqrt(running_var + eps)                # eval-mode BN fold
        bias_eff = beta + (b - running_mean) * scale
        params.append((w, scale, bias_eff))
    return params


def decoder_forward(x_nchw, indices_nchw, params):
    N, Cin, H, W = x_nchw.shape
    Hout, Wout = 2 * H, 2 * W
    # NCHW -> NHWC only touches the small *pooled* tensors.
    x = jnp.transpose(x_nchw, (0, 2, 3, 1)).astype(jnp.float32)
    idx = jnp.transpose(indices_nchw, (0, 2, 3, 1)).astype(jnp.int32)

    u = max_unpool2d_2x2(x, idx)                 # (N, 2H, 2W, Cin), reshape-only glue
    u = u.reshape(N, Hout * Wout, Cin)           # free reshape

    # (3,3,Cin,Cout) HWIO -> (9*Cin, Cout); row order matches the kernel's tap order.
    layer_params = [(w.reshape(9 * w.shape[2], w.shape[3]),
                     s.reshape(1, -1), b.reshape(1, -1)) for (w, s, b) in params]

    y = fused_convs(u, layer_params, Hout, Wout)  # (N, P, Cout)
    Cout = layer_params[-1][0].shape[-1]
    y = y.reshape(N, Hout, Wout, Cout)
    return jnp.transpose(y, (0, 3, 1, 2))         # PyTorch NCHW output


# ----------------------------------------------------------------------------
# Pure-JAX reference (for correctness check only)
# ----------------------------------------------------------------------------
def decoder_reference(x_nchw, indices_nchw, params):
    N, C, H, W = x_nchw.shape
    flat = jnp.zeros((N, C, 4 * H * W), jnp.float32)
    idx = indices_nchw.reshape(N, C, H * W)
    vals = x_nchw.reshape(N, C, H * W)
    scatter = jax.vmap(jax.vmap(lambda o, i, v: o.at[i].set(v)))
    u = scatter(flat, idx, vals).reshape(N, C, 2 * H, 2 * W)
    y = jnp.transpose(u, (0, 2, 3, 1))
    for (w, scale, bias) in params:
        y = lax.conv_general_dilated(y, w, (1, 1), "SAME",
                                     dimension_numbers=("NHWC", "HWIO", "NHWC"))
        y = jnp.maximum(y * scale + bias, 0.0)
    return jnp.transpose(y, (0, 3, 1, 2))


if __name__ == "__main__":
    key = jax.random.PRNGKey(0)
    N, in_ch, out_ch, H, W = 2, 4, 8, 8, 8            # unpooled spatial = 16x16
    k_params, k_x, k_r1, k_r2 = jax.random.split(key, 4)

    params = init_decoder_params(k_params, in_ch, out_ch, block_num=2)
    x = jax.random.normal(k_x, (N, in_ch, H, W), jnp.float32)

    # Valid max_pool2d(2,2,return_indices=True) indices: one argmax per
    # disjoint 2x2 window, flat index into the (2H)*(2W) output plane.
    r1 = jax.random.randint(k_r1, (N, in_ch, H, W), 0, 2)
    r2 = jax.random.randint(k_r2, (N, in_ch, H, W), 0, 2)
    ii = jnp.arange(H).reshape(1, 1, H, 1)
    jj = jnp.arange(W).reshape(1, 1, 1, W)
    indices = ((2 * ii + r1) * (2 * W) + (2 * jj + r2)).astype(jnp.int32)

    out = jax.block_until_ready(decoder_forward(x, indices, params))
    ref = jax.block_until_ready(decoder_reference(x, indices, params))

    assert out.shape == (N, out_ch, 2 * H, 2 * W), out.shape
    assert jnp.allclose(out, ref, atol=5e-4, rtol=5e-4), float(
        jnp.max(jnp.abs(out - ref)))
    print("KERNEL_OK")
</pallas_src>

<mosaic_0001>
module attributes {stable_mosaic.version = 11 : i64} {
  func.func @_unpool_kernel(%arg0: i32, %arg1: memref<1x8x8x4xf32, #tpu.memory_space<vmem>>, %arg2: memref<1x8x8x4xi32, #tpu.memory_space<vmem>>, %arg3: memref<1x8x2x8x8xf32, #tpu.memory_space<vmem>>) attributes {dimension_semantics = [#tpu.dimension_semantics<parallel>], iteration_bounds = array<i64: 2>, scalar_prefetch = 0 : i64, scratch_operands = 0 : i64, tpu.core_type = #tpu.core_type<tc>, window_params = [{transform_indices = @transform_0, window_bounds = array<i64: 1, 8, 8, 4>}, {transform_indices = @transform_1, window_bounds = array<i64: 1, 8, 8, 4>}, {transform_indices = @transform_2, window_bounds = array<i64: 1, 8, 2, 8, 8>}]} {
    %c0 = arith.constant 0 : index
    %c0_0 = arith.constant 0 : index
    %c0_1 = arith.constant 0 : index
    %c0_2 = arith.constant 0 : index
    %0 = vector.load %arg1[%c0, %c0_0, %c0_1, %c0_2] : memref<1x8x8x4xf32, #tpu.memory_space<vmem>>, vector<1x8x8x4xf32>
    %1 = vector.shape_cast %0 : vector<1x8x8x4xf32> to vector<8x8x4xf32>
    %c0_3 = arith.constant 0 : index
    %c0_4 = arith.constant 0 : index
    %c0_5 = arith.constant 0 : index
    %c0_6 = arith.constant 0 : index
    %2 = vector.load %arg2[%c0_3, %c0_4, %c0_5, %c0_6] : memref<1x8x8x4xi32, #tpu.memory_space<vmem>>, vector<1x8x8x4xi32>
    %3 = vector.shape_cast %2 : vector<1x8x8x4xi32> to vector<8x8x4xi32>
    %4 = tpu.iota {dimensions = array<i32: 0>} : vector<8x8x4xi32>
    %5 = tpu.iota {dimensions = array<i32: 1>} : vector<8x8x4xi32>
    %c2_i32 = arith.constant 2 : i32
    %6 = vector.broadcast %c2_i32 : i32 to vector<8x8x4xi32>
    %7 = arith.muli %6, %4 : vector<8x8x4xi32>
    %c16_i32 = arith.constant 16 : i32
    %8 = vector.broadcast %c16_i32 : i32 to vector<8x8x4xi32>
    %9 = arith.muli %7, %8 : vector<8x8x4xi32>
    %c2_i32_7 = arith.constant 2 : i32
    %10 = vector.broadcast %c2_i32_7 : i32 to vector<8x8x4xi32>
    %11 = arith.muli %10, %5 : vector<8x8x4xi32>
    %12 = arith.addi %9, %11 : vector<8x8x4xi32>
    %cst = arith.constant 0.000000e+00 : f32
    %13 = vector.broadcast %cst : f32 to vector<8x8x4xf32>
    %c0_i32 = arith.constant 0 : i32
    %14 = vector.broadcast %c0_i32 : i32 to vector<8x8x4xi32>
    %15 = arith.addi %12, %14 : vector<8x8x4xi32>
    %16 = arith.cmpi eq, %3, %15 : vector<8x8x4xi32>
    %17 = arith.select %16, %1, %13 : vector<8x8x4xi1>, vector<8x8x4xf32>
    %c1_i32 = arith.constant 1 : i32
    %18 = vector.broadcast %c1_i32 : i32 to vector<8x8x4xi32>
    %19 = arith.addi %12, %18 : vector<8x8x4xi32>
    %20 = arith.cmpi eq, %3, %19 : vector<8x8x4xi32>
    %21 = arith.select %20, %1, %13 : vector<8x8x4xi1>, vector<8x8x4xf32>
    %22 = tpu.concatenate %17, %21 in 2 : vector<8x8x4xf32>, vector<8x8x4xf32> -> vector<8x8x8xf32>
    %c0_8 = arith.constant 0 : index
    %c0_9 = arith.constant 0 : index
    %c0_10 = arith.constant 0 : index
    %c0_11 = arith.constant 0 : index
    %c0_12 = arith.constant 0 : index
    %23 = vector.load %arg3[%c0_8, %c0_9, %c0_10, %c0_11, %c0_12] : memref<1x8x2x8x8xf32, #tpu.memory_space<vmem>>, vector<1x8x1x8x8xf32>
    %24 = vector.shape_cast %23 : vector<1x8x1x8x8xf32> to vector<8x8x8xf32>
    %25 = vector.shape_cast %22 : vector<8x8x8xf32> to vector<1x8x1x8x8xf32>
    tpu.vector_store %arg3[%c0_8, %c0_9, %c0_10, %c0_11, %c0_12], %25 {strides = array<i32>} : memref<1x8x2x8x8xf32, #tpu.memory_space<vmem>>, vector<1x8x1x8x8xf32>,
    %c16_i32_13 = arith.constant 16 : i32
    %26 = vector.broadcast %c16_i32_13 : i32 to vector<8x8x4xi32>
    %27 = arith.addi %12, %26 : vector<8x8x4xi32>
    %28 = arith.cmpi eq, %3, %27 : vector<8x8x4xi32>
    %29 = arith.select %28, %1, %13 : vector<8x8x4xi1>, vector<8x8x4xf32>
    %c17_i32 = arith.constant 17 : i32
    %30 = vector.broadcast %c17_i32 : i32 to vector<8x8x4xi32>
    %31 = arith.addi %12, %30 : vector<8x8x4xi32>
    %32 = arith.cmpi eq, %3, %31 : vector<8x8x4xi32>
    %33 = arith.select %32, %1, %13 : vector<8x8x4xi1>, vector<8x8x4xf32>
    %34 = tpu.concatenate %29, %33 in 2 : vector<8x8x4xf32>, vector<8x8x4xf32> -> vector<8x8x8xf32>
    %c0_14 = arith.constant 0 : index
    %c0_15 = arith.constant 0 : index
    %c1 = arith.constant 1 : index
    %c0_16 = arith.constant 0 : index
    %c0_17 = arith.constant 0 : index
    %35 = vector.load %arg3[%c0_14, %c0_15, %c1, %c0_16, %c0_17] : memref<1x8x2x8x8xf32, #tpu.memory_space<vmem>>, vector<1x8x1x8x8xf32>
    %36 = vector.shape_cast %35 : vector<1x8x1x8x8xf32> to vector<8x8x8xf32>
    %37 = vector.shape_cast %34 : vector<8x8x8xf32> to vector<1x8x1x8x8xf32>
    tpu.vector_store %arg3[%c0_14, %c0_15, %c1, %c0_16, %c0_17], %37 {strides = array<i32>} : memref<1x8x2x8x8xf32, #tpu.memory_space<vmem>>, vector<1x8x1x8x8xf32>,
    return
  }
  func.func @transform_0(%arg0: i32) -> (i32, i32, i32, i32) {
    %c0_i32 = arith.constant 0 : i32
    %c0_i32_0 = arith.constant 0 : i32
    %c0_i32_1 = arith.constant 0 : i32
    %c0_i32_2 = arith.constant 0 : i32
    return %arg0, %c0_i32, %c0_i32_0, %c0_i32_1 : i32, i32, i32, i32
  }
  func.func @transform_1(%arg0: i32) -> (i32, i32, i32, i32) {
    %c0_i32 = arith.constant 0 : i32
    %c0_i32_0 = arith.constant 0 : i32
    %c0_i32_1 = arith.constant 0 : i32
    %c0_i32_2 = arith.constant 0 : i32
    return %arg0, %c0_i32, %c0_i32_0, %c0_i32_1 : i32, i32, i32, i32
  }
  func.func @transform_2(%arg0: i32) -> (i32, i32, i32, i32, i32) {
    %c0_i32 = arith.constant 0 : i32
    %c0_i32_0 = arith.constant 0 : i32
    %c0_i32_1 = arith.constant 0 : i32
    %c0_i32_2 = arith.constant 0 : i32
    %c0_i32_3 = arith.constant 0 : i32
    return %arg0, %c0_i32, %c0_i32_0, %c0_i32_1, %c0_i32_2 : i32, i32, i32, i32, i32
  }
}

</mosaic_0001>

<bundles_post_ra>
// kernel: tpu_custom_call.1
= control target key start
LH: loop header
LB: loop body
LE: loop exit
PB: predicated region body
PF: predicated region fallthrough
CT: control target
= control target key end

     0   :  { %7 = vsyncpa [#allocation3], 0  ;;  %s993_s0 = inlined_call_operand.vmem [shape: f32[2,8,8,4], index: 0, kind: input, shape index: {}]   ;;  %s994_s1 = inlined_call_operand.vmem [shape: s32[2,8,8,4], index: 1, kind: input, shape index: {}]   ;;  %s995_s2 = inlined_call_operand.hbm [shape: f32[2,8,2,8,8], index: 2, kind: output, shape index: {}]  }
   0x1   :  { %9 = vsyncpa [#allocation3 + $0x1], 0  ;;  %s613_s9 = smov 0   ;;  %s615_s10 = smov 0  }
   0x2   :  { %s617_s11 = smov 0   ;;  %s619_s12 = smov 0  }
   0x3 LB: > { %s634_s13 = sadd.s32 4294967295, %s592_s12   ;;  %s463_s14 = sadd.s32 4294967294, %s592_s12   ;;  %s592_s12 = sphi %s619_s12, %s1001_s12   ;;  %s588_s11 = sphi %s617_s11, %s1000_s11   ;;  %s584_s10 = sphi %s615_s10, %s999_s10   ;;  %s580_s9 = sphi %s613_s9, %s998_s9  }
   0x4   : > { %s638_s15 = sadd.s32 1, %s592_s12   ;;  %s74_s16 = sadd.s32 1, %s588_s11 }
   0x5   : > { %s71_s17 = ssub.s32 %s592_s12, %s638_s15  ;;  %p84_p0 = scmp.ne.s32.totalorder %s588_s11, %s584_s10 }
   0x6   : > { %p72_p1 = scmp.eq.s32.totalorder %s71_s17, 0  ;;  %p85_p2 = scmp.eq.s32.totalorder %s634_s13, 1 }
   0x7   : > { %p90_p3 = scmp.ne.s32.totalorder %s584_s10, %s580_s9  ;;  %p91_p4 = scmp.eq.s32.totalorder %s463_s14, 1 }
   0x8   : > { %s649_s18 = scalar_select %p72_p1, %s588_s11, %s74_s16  }
   0x9   : > { %p651_p5 = por %p85_p2, %p84_p0  ;;  %p655_p6 = por %p91_p4, %p90_p3 }
   0xa   : > { %p466_p7 = scmp.ge.s32.totalorder %s592_s12, 1  ;;  %p125_p8 = scmp.lt.s32.totalorder %s592_s12, 3 }
   0xc   : > { %p126_p9 = pnand %p466_p7, %p125_p8 }
   0xd   : > { %p152_p10 = scmp.lt.s32.totalorder (!%p126_p9), %s634_s13, 1  ;;  %v178_v0 = vlaneseq (!%p126_p9)  ;;  %s594_s29 = smov (!%p126_p9), 4  }
   0xe   : > { %129 = sbr.rel (%p126_p9) target bundleno = 188 (0xbc), region = 28  ;;  %s149_s30 = sand.u32 (!%p126_p9), 1, %s584_s10  }
   0xf   : > { %v179_v1 = vshrl.u32 (!%p126_p9), %v178_v0, 7  ;;  %s467_s3 = sshll.u32 (!%p126_p9), %s149_s30, 7  ;;  %s487_s5 = sshll.u32 (!%p126_p9), %s634_s13, 11 }
  0x10   : > { %s881_s4 = scalar_lea.vmem (!%p126_p9), [#allocation2], %s467_s3  ;;  %s940_s14 = scalar_lea.hbm (!%p126_p9), %s995_s2, %s487_s5 }
  0x11   : > { %v663_v2 = vmul.u32 (!%p126_p9), 2, %v179_v1  ;;  %s389_s6 = sshll.u32 (!%p126_p9), %s881_s4, 4  ;;  %s595_s17 = smov (!%p126_p9), [#allocation2]   ;;  %s942_s6 = int_to_ptr.vmem [resolvable:$true] %s389_s6 }
  0x12   : > { %s530_s16 = scalar_lea.vmem (!%p126_p9), %s942_s6, 2048 }
  0x13   : > { %v676_v3 = vadd.s32 (!%p126_p9), 64, %v663_v2  ;;  %v204_v5 = vadd.s32 (!%p126_p9), 1, %v663_v2  ;;  %v683_v6 = vadd.s32 (!%p126_p9), 96, %v663_v2  ;;  %v695_v10 = vadd.s32 (!%p126_p9), 32, %v663_v2  ;;  %p531_p11 = scmp.ne.s32.totalorder (!%p126_p9), %s942_s6, %s530_s16 }
  0x14   : > { %v698_v11 = vadd.s32 (!%p126_p9), 160, %v663_v2  ;;  %v701_v12 = vadd.s32 (!%p126_p9), 128, %v663_v2  ;;  %v713_v17 = vadd.s32 (!%p126_p9), 224, %v663_v2  ;;  %v186_v32 = vadd.s32 (!%p126_p9), 192, %v663_v2 }
  0x15   : > { %s153_s21 = scalar_select %p152_p10, %s634_s13, 1  ;;  %v206_v14 = vadd.s32 1, %v676_v3  ;;  %v207_v15 = vadd.s32 1, %v683_v6  ;;  %v205_v20 = vadd.s32 1, %v695_v10  ;;  %v303_v33 = vadd.s32 17, %v695_v10 }
  0x16   : > { %v209_v23 = vadd.s32 1, %v698_v11  ;;  %v208_v24 = vadd.s32 1, %v701_v12  ;;  %v211_v27 = vadd.s32 1, %v713_v17  ;;  %v302_v36 = vadd.s32 17, %v663_v2  ;;  %s952_s13 = scalar_lea.sflag [#allocation3], %s149_s30  ;;  %p532_p12 = pnand %p531_p11, %p651_p5 }
  0x17   : > { %s485_s22 = sshll.u32 %s153_s21, 6  ;;  %v305_v37 = vadd.s32 17, %v683_v6  ;;  %v304_v38 = vadd.s32 17, %v676_v3  ;;  %v210_v41 = vadd.s32 1, %v186_v32  ;;  %v306_v44 = vadd.s32 17, %v701_v12  ;;  %s534_s21 = sshll.u32 %s595_s17, 4  ;;  %s535_s21 = int_to_ptr.vmem [resolvable:$false] %s534_s21 }
  0x18   : > { %s668_s25 = scalar_lea.vmem %s993_s0, %s485_s22  ;;  %s673_s28 = scalar_lea.vmem %s994_s1, %s485_s22  ;;  %v307_v47 = vadd.s32 17, %v698_v11  ;;  %v308_v56 = vadd.s32 17, %v186_v32  ;;  %v279_v61 = vadd.s32 16, %v695_v10  ;;  %v278_v62 = vadd.s32 16, %v663_v2 }
  0x19   : > { %v679_v4 = vld [vmem:[%s668_s25] sm:$0xff]  ;;  %v686_v7 = vld [vmem:[%s673_s28 + $0x10] sm:$0xff]  ;;  %v692_v9 = vld [vmem:[%s673_s28 + $0x18] sm:$0xff]  ;;  %v281_v63 = vadd.s32 16, %v683_v6  ;;  %v280_v0 = vadd.s32 16, %v676_v3  ;;  %v283_v1 = vadd.s32 16, %v698_v11  ;;  %p533_p13 = pneg %p532_p12  ;;  %p537_p0 = scmp.lt.s32.totalorder %s942_s6, %s535_s21 }
  0x1a   : > { %v689_v8 = vld [vmem:[%s673_s28] sm:$0xff]  ;;  %v704_v13 = vld [vmem:[%s668_s25 + $0x10] sm:$0xff]  ;;  %v710_v16 = vld [vmem:[%s673_s28 + $0x8] sm:$0xff]  ;;  %vm190_vm1 = vcmp.eq.s32.totalorder %v686_v7, %v676_v3  ;;  %vm214_vm2 = vcmp.eq.s32.totalorder %v686_v7, %v206_v14  ;;  %vm215_vm3 = vcmp.eq.s32.totalorder %v692_v9, %v207_v15  ;;  %vm313_vm10 = vcmp.eq.s32.totalorder %v692_v9, %v305_v37  ;;  %s536_s22 = scalar_lea.vmem %s535_s21, 4096 }
  0x1b   : > { %vm212_vm0 = vcmp.eq.s32.totalorder %v689_v8, %v204_v5  ;;  %v717_v19 = vld [vmem:[%s668_s25 + $0x8] sm:$0xff]  ;;  %v721_v21 = vld [vmem:[%s673_s28 + $0x20] sm:$0xff]  ;;  %v728_v22 = vld [vmem:[%s668_s25 + $0x18] sm:$0xff]  ;;  %v222_v25 = vsel %vm214_vm2, %v704_v13, 0.0  ;;  %vm213_vm4 = vcmp.eq.s32.totalorder %v710_v16, %v205_v20  ;;  %vm311_vm8 = vcmp.eq.s32.totalorder %v710_v16, %v303_v33  ;;  %p538_p1 = scmp.lt.s32.totalorder %s536_s22, %s530_s16 }
  0x1c   : > { %v220_v18 = vsel %vm212_vm0, %v679_v4, 0.0  ;;  %v736_v26 = vld [vmem:[%s673_s28 + $0x28] sm:$0xff]  ;;  %240 = vrot.lane.b32.xlu1 %v222_v25, %s594_s29  ;;  %v221_v28 = vsel %vm213_vm4, %v717_v19, 0.0  ;;  %v742_v29 = vld [vmem:[%s668_s25 + $0x20] sm:$0xff]  ;;  %vm216_vm5 = vcmp.eq.s32.totalorder %v721_v21, %v208_v24  ;;  %v746_v30 = vld [vmem:[%s673_s28 + $0x38] sm:$0xff]  ;;  %v223_v31 = vsel %vm215_vm3, %v728_v22, 0.0 }
  0x1d   : > { %236 = vrot.lane.b32.xlu0 %v220_v18, %s594_s29  ;;  %v753_v34 = vld [vmem:[%s668_s25 + $0x28] sm:$0xff]  ;;  %vm217_vm6 = vcmp.eq.s32.totalorder %v736_v26, %v209_v23  ;;  %v757_v35 = vld [vmem:[%s673_s28 + $0x30] sm:$0xff]  ;;  %v224_v39 = vsel %vm216_vm5, %v742_v29, 0.0  ;;  %v764_v40 = vld [vmem:[%s668_s25 + $0x38] sm:$0xff]  ;;  %vm219_vm7 = vcmp.eq.s32.totalorder %v746_v30, %v211_v27  ;;  %vm310_vm9 = vcmp.eq.s32.totalorder %v689_v8, %v302_v36  ;;  %p539_p2 = por %p538_p1, %p537_p0 }
  0x1e   : > { %v770_v42 = vld [vmem:[%s668_s25 + $0x30] sm:$0xff]  ;;  %vm312_vm11 = vcmp.eq.s32.totalorder %v686_v7, %v304_v38  ;;  %v225_v43 = vsel %vm217_vm6, %v753_v34, 0.0  ;;  %vm218_vm12 = vcmp.eq.s32.totalorder %v757_v35, %v210_v41  ;;  %v227_v45 = vsel %vm219_vm7, %v764_v40, 0.0 }
  0x1f   : > { %v319_v46 = vsel %vm311_vm8, %v717_v19, 0.0  ;;  %v226_v48 = vsel %vm218_vm12, %v770_v42, 0.0  ;;  %v318_v49 = vsel %vm310_vm9, %v679_v4, 0.0  ;;  %v321_v50 = vsel %vm313_vm10, %v728_v22, 0.0  ;;  %p540_p3 = pnand %p539_p2, %p533_p13 }
  0x20   : > { %242 = vrot.lane.b32.xlu1 %v223_v31, %s594_s29  ;;  %v320_v51 = vsel %vm312_vm11, %v704_v13, 0.0  ;;  %v791_v52 = vsel %vm190_vm1, %v704_v13, 0.0  ;;  %vm188_vm13 = vcmp.eq.s32.totalorder %v689_v8, %v663_v2  ;;  %vm191_vm14 = vcmp.eq.s32.totalorder %v692_v9, %v683_v6 }
  0x21   : > { %238 = vrot.lane.b32.xlu0 %v221_v28, %s594_s29  ;;  %vm189_vm15 = vcmp.eq.s32.totalorder %v710_v16, %v695_v10  ;;  %vm314_vm0 = vcmp.eq.s32.totalorder %v721_v21, %v306_v44  ;;  %v196_v53 = vsel %vm188_vm13, %v679_v4, 0.0  ;;  %v802_v54 = vsel %vm191_vm14, %v728_v22, 0.0 }
  0x22   : > { %v805_v55 = vsel %vm189_vm15, %v717_v19, 0.0  ;;  %vm193_vm1 = vcmp.eq.s32.totalorder %v736_v26, %v698_v11  ;;  %vm192_vm2 = vcmp.eq.s32.totalorder %v721_v21, %v701_v12  ;;  %vm195_vm3 = vcmp.eq.s32.totalorder %v746_v30, %v713_v17 }
  0x23   : > { %v815_v57 = vsel %vm193_vm1, %v753_v34, 0.0  ;;  %v818_v58 = vsel %vm192_vm2, %v742_v29, 0.0  ;;  %v821_v59 = vsel %vm195_vm3, %v764_v40, 0.0  ;;  %vm194_vm4 = vcmp.eq.s32.totalorder %v757_v35, %v186_v32 }
  0x24   : > { %246 = vrot.lane.b32.xlu1 %v225_v43, %s594_s29  ;;  %v826_v60 = vsel %vm194_vm4, %v770_v42, 0.0  ;;  %v282_v5 = vadd.s32 16, %v701_v12  ;;  %v285_v14 = vadd.s32 16, %v713_v17  ;;  %vm287_vm5 = vcmp.eq.s32.totalorder %v710_v16, %v279_v61 }
  0x25   : > { %244 = vrot.lane.b32.xlu0 %v224_v39, %s594_s29  ;;  %vm286_vm6 = vcmp.eq.s32.totalorder %v689_v8, %v278_v62  ;;  %vm289_vm7 = vcmp.eq.s32.totalorder %v692_v9, %v281_v63  ;;  %v284_v10 = vadd.s32 16, %v186_v32  ;;  %v295_v2 = vsel %vm287_vm5, %v717_v19, 0.0 }
  0x26   : > { %v294_v6 = vsel %vm286_vm6, %v679_v4, 0.0  ;;  %v842_v3 = vsel %vm289_vm7, %v728_v22, 0.0  ;;  %vm288_vm8 = vcmp.eq.s32.totalorder %v686_v7, %v280_v0  ;;  %vm291_vm9 = vcmp.eq.s32.totalorder %v736_v26, %v283_v1 }
  0x27   : > { %v296_v11 = vsel %vm288_vm8, %v704_v13, 0.0  ;;  %vm290_vm10 = vcmp.eq.s32.totalorder %v721_v21, %v282_v5  ;;  %vm293_vm11 = vcmp.eq.s32.totalorder %v746_v30, %v285_v14  ;;  %v851_v8 = vsel %vm291_vm9, %v753_v34, 0.0 }
  0x28   : > { %250 = vrot.lane.b32.xlu1 %v227_v45, %s594_s29  ;;  %v298_v4 = vsel %vm290_vm10, %v742_v29, 0.0  ;;  %v855_v9 = vsel %vm293_vm11, %v764_v40, 0.0  ;;  %vm292_vm12 = vcmp.eq.s32.totalorder %v757_v35, %v284_v10  ;;  %vm315_vm13 = vcmp.eq.s32.totalorder %v736_v26, %v307_v47 }
  0x29   : > { %248 = vrot.lane.b32.xlu0 %v226_v48, %s594_s29  ;;  %v309_v7 = vadd.s32 17, %v713_v17  ;;  %v862_v12 = vsel %vm292_vm12, %v770_v42, 0.0  ;;  %v322_v13 = vsel %vm314_vm0, %v742_v29, 0.0  ;;  %vm316_vm14 = vcmp.eq.s32.totalorder %v757_v35, %v308_v56 }
  0x2a   : > { %v323_v15 = vsel %vm315_vm13, %v753_v34, 0.0  ;;  %v324_v16 = vsel %vm316_vm14, %v770_v42, 0.0  ;;  %vm260_vm0 = vcmask 31744   ;;  %vm269_vm1 = vcmask 64512  }
  0x2b   : > { %vm317_vm15 = vcmp.eq.s32.totalorder %v746_v30, %v309_v7 }
  0x2c   : > { %336 = vrot.lane.b32.xlu1 %v319_v46, %s594_s29  ;;  %v325_v17 = vsel %vm317_vm15, %v764_v40, 0.0 }
  0x2d   : > { %334 = vrot.lane.b32.xlu0 %v318_v49, %s594_s29 }
  0x30   : > { %340 = vrot.lane.b32.xlu1 %v321_v50, %s594_s29 }
  0x31   : > { %338 = vrot.lane.b32.xlu0 %v320_v51, %s594_s29 }
  0x34   : > { %344 = vrot.lane.b32.xlu1 %v323_v15, %s594_s29 }
  0x35   : > { %342 = vrot.lane.b32.xlu0 %v322_v13, %s594_s29 }
  0x38   : > { %348 = vrot.lane.b32.xlu1 %v325_v17, %s594_s29 }
  0x39   : > { %346 = vrot.lane.b32.xlu0 %v324_v16, %s594_s29 }
  0x8e   : > { %v241_v20 = vpop.permute.xlu1 %240 }
  0x8f   : > { %v237_v18 = vpop.permute.xlu0 %236  ;;  %v263_v21 = vsel %vm260_vm0, %v791_v52, %v241_v20 }
  0x90   : > { %v261_v19 = vsel %vm260_vm0, %v196_v53, %v237_v18  ;;  %272 = vst.msk [vmem:[%s881_s4 + $0x20] sm:$0xff] %vm269_vm1, %v263_v21 }
  0x91   : > { %270 = vst.msk [vmem:[%s881_s4] sm:$0xff] %vm269_vm1, %v261_v19 }
  0x92   : > { %v243_v24 = vpop.permute.xlu1 %242 }
  0x93   : > { %v239_v22 = vpop.permute.xlu0 %238  ;;  %v264_v25 = vsel %vm260_vm0, %v802_v54, %v243_v24 }
  0x94   : > { %v262_v23 = vsel %vm260_vm0, %v805_v55, %v239_v22  ;;  %273 = vst.msk [vmem:[%s881_s4 + $0x30] sm:$0xff] %vm269_vm1, %v264_v25 }
  0x95   : > { %271 = vst.msk [vmem:[%s881_s4 + $0x10] sm:$0xff] %vm269_vm1, %v262_v23 }
  0x96   : > { %v247_v28 = vpop.permute.xlu1 %246 }
  0x97   : > { %v245_v26 = vpop.permute.xlu0 %244  ;;  %v266_v29 = vsel %vm260_vm0, %v815_v57, %v247_v28 }
  0x98   : > { %v265_v27 = vsel %vm260_vm0, %v818_v58, %v245_v26  ;;  %275 = vst.msk [vmem:[%s881_s4 + $0x50] sm:$0xff] %vm269_vm1, %v266_v29 }
  0x99   : > { %274 = vst.msk [vmem:[%s881_s4 + $0x40] sm:$0xff] %vm269_vm1, %v265_v27 }
  0x9a   : > { %v251_v32 = vpop.permute.xlu1 %250 }
  0x9b   : > { %v249_v30 = vpop.permute.xlu0 %248  ;;  %v268_v33 = vsel %vm260_vm0, %v821_v59, %v251_v32 }
  0x9c   : > { %v267_v31 = vsel %vm260_vm0, %v826_v60, %v249_v30  ;;  %277 = vst.msk [vmem:[%s881_s4 + $0x70] sm:$0xff] %vm269_vm1, %v268_v33 }
  0x9d   : > { %276 = vst.msk [vmem:[%s881_s4 + $0x60] sm:$0xff] %vm269_vm1, %v267_v31 }
  0x9e   : > { %v337_v36 = vpop.permute.xlu1 %336 }
  0x9f   : > { %v335_v34 = vpop.permute.xlu0 %334  ;;  %v359_v37 = vsel %vm260_vm0, %v295_v2, %v337_v36 }
  0xa0   : > { %v358_v35 = vsel %vm260_vm0, %v294_v6, %v335_v34  ;;  %473 = vst.msk [vmem:[%s881_s4 + $0x18] sm:$0xff] %vm269_vm1, %v359_v37 }
  0xa1   : > { %472 = vst.msk [vmem:[%s881_s4 + $0x8] sm:$0xff] %vm269_vm1, %v358_v35 }
  0xa2   : > { %v341_v40 = vpop.permute.xlu1 %340 }
  0xa3   : > { %v339_v38 = vpop.permute.xlu0 %338  ;;  %v361_v41 = vsel %vm260_vm0, %v842_v3, %v341_v40 }
  0xa4   : > { %v360_v39 = vsel %vm260_vm0, %v296_v11, %v339_v38  ;;  %475 = vst.msk [vmem:[%s881_s4 + $0x38] sm:$0xff] %vm269_vm1, %v361_v41 }
  0xa5   : > { %474 = vst.msk [vmem:[%s881_s4 + $0x28] sm:$0xff] %vm269_vm1, %v360_v39 }
  0xa6   : > { %v345_v44 = vpop.permute.xlu1 %344 }
  0xa7   : > { %v343_v42 = vpop.permute.xlu0 %342  ;;  %v363_v45 = vsel %vm260_vm0, %v851_v8, %v345_v44 }
  0xa8   : > { %v362_v43 = vsel %vm260_vm0, %v298_v4, %v343_v42  ;;  %477 = vst.msk [vmem:[%s881_s4 + $0x58] sm:$0xff] %vm269_vm1, %v363_v45 }
  0xa9   : > { %476 = vst.msk [vmem:[%s881_s4 + $0x48] sm:$0xff] %vm269_vm1, %v362_v43 }
  0xaa   : > { %v349_v48 = vpop.permute.xlu1 %348 }
  0xab   : > { %v347_v46 = vpop.permute.xlu0 %346  ;;  %v365_v49 = vsel %vm260_vm0, %v855_v9, %v349_v48 }
  0xac   : > { %v364_v47 = vsel %vm260_vm0, %v862_v12, %v347_v46  ;;  %479 = vst.msk [vmem:[%s881_s4 + $0x78] sm:$0xff] %vm269_vm1, %v365_v49 }
  0xad   : > { %478 = vst.msk [vmem:[%s881_s4 + $0x68] sm:$0xff] %vm269_vm1, %v364_v47 }
  0xae   : > { %543 = shalt.err (!%p540_p3)
}
  0xaf   : > { %s544_s23 = scalar_lea.hbm %s940_s14, 2048  ;;  %s548_s26 = scalar_lea.hbm %s995_s2, 4096 }
  0xb0   : > { %p545_p4 = scmp.ne.s32.totalorder %s940_s14, %s544_s23  ;;  %p549_p9 = scmp.lt.u32.totalorder %s940_s14, %s995_s2 }
  0xb1   : > { %p550_p10 = scmp.lt.u32.totalorder %s548_s26, %s544_s23  ;;  %p552_p12 = scmp.lt.u32.totalorder %s544_s23, %s940_s14 }
  0xb2   : > { %p546_p7 = pnand %p545_p4, %p651_p5 }
  0xb3   : > { %p551_p11 = por %p550_p10, %p549_p9 }
  0xb4   : > { %p547_p8 = pneg %p546_p7 }
  0xb5   : > { %p553_p13 = por %p552_p12, %p551_p11 }
  0xb7   : > { %p554_p0 = pnand %p553_p13, %p547_p8 }
  0xb9   : > { %557 = shalt.err (!%p554_p0)
}
  0xba   : > { %s596_s29 = smov 128   ;;  %s597_s30 = smov 8  }
  0xbb   : > { %488 = dma.vmem_to_hbm [thread:$0]  (%p651_p5), %s942_s6, 2048, %s940_s14, %s952_s13, %s596_s29, %s596_s29, %s597_s30  }
  0xbc PF: > { %p494_p1 = scmp.ge.s32.totalorder %s592_s12, 2  ;;  %s404_s3 = sand.u32 1, %s580_s9  }
  0xbd   : > { %s405_s4 = scalar_lea.sflag [#allocation3], %s404_s3 }
  0xbe   : > { %p491_p2 = pnand %p494_p1, %p655_p6 }
  0xc0   : > { %575 = dma.done.wait (!%p491_p2), %s405_s4, 2048  }
  0xc1   : > { %577 = vsyncadd (!%p491_p2), %s405_s4, 4294965248  ;;  %p12_p3 = scmp.ge.s32.totalorder %s638_s15, 4   ;;  %s998_s9 = smov %s584_s10 }
  0xc2   : > { %s999_s10 = smov %s588_s11  ;;  %s1000_s11 = smov %s649_s18 }
  0xc3   : > { %s1001_s12 = smov %s638_s15  ;;  %14 = sbr.rel (!%p12_p3) target bundleno = 3 (0x3), region = 67 }
  0xca   :  { %410 = vsyncpa [#allocation3], 1 }
  0xcb   :  { %412 = vsyncpa [#allocation3 + $0x1], 1 }

</bundles_post_ra>
